<compile_context>
chip_gen: v7x
topology: tpu7x:2x2x1
jax: 0.10.0
libtpu: 0.0.40
codegen_flags: <defaults>
</compile_context>

<pallas_src>
import functools
import math

import jax
import jax.numpy as jnp
from jax.experimental import pallas as pl
from jax.experimental.pallas import tpu as pltpu


def _gaussian_weights(kernel_size, sigma):
    # matches torchmetrics _gaussian: exp(-(d/sigma)^2 / 2), normalized
    dist = [i - (kernel_size - 1) / 2.0 for i in range(kernel_size)]
    g = [math.exp(-((d / sigma) ** 2) / 2.0) for d in dist]
    s = sum(g)
    return tuple(v / s for v in g)


def _ssim_partial_kernel(x_ref, y_ref, bw_ref, bh_ref, lmask_ref, out_ref, *,
                         c1, c2, tb, ho, n_img):
    """One grid step: lane-wise SSIM partial sums for a block of TB images."""
    hp = x_ref.shape[1]                      # H padded to a multiple of 8
    w = x_ref.shape[2]
    wop = bw_ref.shape[1]

    x = x_ref[...].astype(jnp.float32)       # (TB, Hp, W)
    y = y_ref[...].astype(jnp.float32)

    bw = bw_ref[...]                                          # (W,  Wop) f32
    # Hoisted once, reused by all five blurs (JAX does not CSE broadcasts).
    bh_b = jnp.broadcast_to(bh_ref[...], (tb, ho, hp))        # (TB, Ho, Hp) f32

    def blur(f):
        # width pass: lane-dense MXU matmul, f32 operands / f32 accumulation
        zw = jnp.dot(f.reshape(tb * hp, w), bw,
                     preferred_element_type=jnp.float32)
        zw = zw.reshape(tb, hp, wop)                          # (TB, Hp, Wop)
        # height pass: batched MXU matmul contracting the sublane axis (Hp);
        # output stays lane-dense in Wop, no transpose required.
        return jnp.einsum('bph,bhw->bpw', bh_b, zw,
                          preferred_element_type=jnp.float32)  # (TB, Ho, Wop)

    mu_x = blur(x)
    mu_y = blur(y)
    e_xx = blur(x * x)        # second moments stay f32 end-to-end
    e_yy = blur(y * y)
    e_xy = blur(x * y)

    mu_x2 = mu_x * mu_x
    mu_y2 = mu_y * mu_y
    mu_xy = mu_x * mu_y
    sig_x = e_xx - mu_x2
    sig_y = e_yy - mu_y2
    sig_xy = e_xy - mu_xy

    num = (2.0 * mu_xy + c1) * (2.0 * sig_xy + c2)
    den = (mu_x2 + mu_y2 + c1) * (sig_x + sig_y + c2)
    ssim_map = num * pl.reciprocal(den, approx=True)          # EUP, not VALU

    # Reduce over windows first (XLU sublane reduce), then mask per image on the
    # small (TB, Wop) array (handles the ragged last block without any HBM
    # padding copy; jnp.where also kills NaN/garbage from the unfilled buffer).
    per_img = jnp.sum(ssim_map, axis=1)                       # (TB, Wop)
    img_ids = jax.lax.broadcasted_iota(jnp.int32, per_img.shape, 0)
    valid = (img_ids + pl.program_id(0) * tb) < n_img
    per_img = jnp.where(valid, per_img, 0.0)

    row = jnp.sum(per_img, axis=0, keepdims=True)             # (1, Wop)
    # Lane mask (w < Wo) is grid-invariant: one vreg-width multiply per step.
    out_ref[0] = row * lmask_ref[...]


def dssim_loss(preds, target, data_range=1.0, kernel_size=11, sigma=1.5):
    """(1 - SSIM(preds, target)) / 2 with the SSIM hot path in a Pallas kernel."""
    N, C, H, W = preds.shape
    K = kernel_size
    Ho, Wo = H - K + 1, W - K + 1
    assert Ho > 0 and Wo > 0, "spatial dims must exceed the SSIM kernel size"
    NC = N * C
    Wop = ((Wo + 127) // 128) * 128          # lane-dense matmul / store width
    Hp = ((H + 7) // 8) * 8                  # sublane-aligned H (reshape stays free)

    g = jnp.asarray(_gaussian_weights(K, sigma), dtype=jnp.float32)

    # Width band matrix (valid cross-correlation), zero-padded columns past Wo.
    iw = jnp.arange(W)[:, None] - jnp.arange(Wop)[None, :]
    okw = (iw >= 0) & (iw < K) & (jnp.arange(Wop)[None, :] < Wo)
    bw = jnp.where(okw, g[jnp.clip(iw, 0, K - 1)], 0.0).astype(jnp.float32)

    # Height band matrix (Ho, Hp); the band never reaches the padded rows.
    ih = jnp.arange(Hp)[None, :] - jnp.arange(Ho)[:, None]
    okh = (ih >= 0) & (ih < K)
    bh = jnp.where(okh, g[jnp.clip(ih, 0, K - 1)], 0.0).astype(jnp.float32)

    # 0/1 lane mask applied to the reduced row inside the kernel.
    lmask = (jnp.arange(Wop) < Wo).astype(jnp.float32).reshape(1, Wop)

    # Keep inputs in their original dtype (bf16 halves DMA bytes); cast in-kernel.
    x = preds.reshape(NC, H, W)
    y = target.reshape(NC, H, W)
    if Hp != H:
        zpad = jnp.zeros((NC, Hp - H, W), x.dtype)
        x = jnp.concatenate([x, zpad], axis=1)
        y = jnp.concatenate([y, zpad], axis=1)

    # ---- generation-aware VMEM budget ---------------------------------------
    try:
        vmem_cap = int(pltpu.get_tpu_info().vmem_capacity_bytes)
    except Exception:
        vmem_cap = 64 * 1024 * 1024          # conservative fallback (v7x-sized)
    vmem_limit = max(32 << 20, min(96 << 20, (vmem_cap * 3) // 4))
    budget = max(12 << 20, (vmem_limit // 2) - (2 << 20))

    # Corrected per-image VMEM estimate (includes f32 copies and temporaries).
    in_bytes = x.dtype.itemsize
    per_img = (4 * Hp * W * in_bytes       # x, y double-buffered input blocks
               + 3 * Hp * W * 4            # x, y in f32 + one live product
               + 2 * Hp * Wop * 4          # width-pass output (f32) + slack
               + 5 * Ho * Wop * 4          # the five blurred fields
               + 6 * Ho * Wop * 4          # SSIM elementwise temporaries
               + Ho * Hp * 4)              # broadcast height band per image
    fixed = 2 * (W * Wop * 4) + 2 * (Ho * Hp * 4) + 4 * Wop * 4 + (1 << 20)
    tb_budget = max(1, (budget - fixed) // per_img)

    # Cap TB so the grid has >= 4 steps when possible: enables v7x megacore
    # sharding (needs >= 2) and cross-step DMA/compute pipelining.
    TB = int(max(1, min(tb_budget, -(-NC // 4))))
    G = -(-NC // TB)                       # cdiv; NO batch padding copy in HBM

    c1 = float((0.01 * data_range) ** 2)
    c2 = float((0.03 * data_range) ** 2)

    partials = pl.pallas_call(
        functools.partial(_ssim_partial_kernel, c1=c1, c2=c2,
                          tb=TB, ho=Ho, n_img=NC),
        out_shape=jax.ShapeDtypeStruct((G, 1, Wop), jnp.float32),
        grid_spec=pltpu.PrefetchScalarGridSpec(
            num_scalar_prefetch=0,
            grid=(G,),
            in_specs=[
                pl.BlockSpec((TB, Hp, W), lambda i: (i, 0, 0)),
                pl.BlockSpec((TB, Hp, W), lambda i: (i, 0, 0)),
                pl.BlockSpec((W, Wop), lambda i: (0, 0)),
                pl.BlockSpec((Ho, Hp), lambda i: (0, 0)),
                pl.BlockSpec((1, Wop), lambda i: (0, 0)),
            ],
            out_specs=pl.BlockSpec((1, 1, Wop), lambda i: (i, 0, 0)),
        ),
        compiler_params=pltpu.CompilerParams(
            dimension_semantics=("parallel",),   # shards blocks across v7x TCs
            vmem_limit_bytes=int(vmem_limit),
        ),
    )(x, y, bw, bh, lmask)

    mean_ssim = jnp.sum(partials) / (NC * Ho * Wo)
    return (1.0 - mean_ssim) / 2.0


def _dssim_reference(preds, target, data_range=1.0, kernel_size=11, sigma=1.5):
    """Pure-JAX f32 reference (valid-window SSIM, same as torchmetrics)."""
    N, C, H, W = preds.shape
    K = kernel_size
    Ho, Wo = H - K + 1, W - K + 1
    g = jnp.asarray(_gaussian_weights(K, sigma), dtype=jnp.float32)

    def band(n_in, n_out):
        idx = jnp.arange(n_in)[:, None] - jnp.arange(n_out)[None, :]
        ok = (idx >= 0) & (idx < K)
        return jnp.where(ok, g[jnp.clip(idx, 0, K - 1)], 0.0)

    bw, bh = band(W, Wo), band(H, Ho)
    x = preds.reshape(N * C, H, W).astype(jnp.float32)
    y = target.reshape(N * C, H, W).astype(jnp.float32)
    hi = jax.lax.Precision.HIGHEST

    def blur(v):
        t = jnp.einsum('nhw,wo->nho', v, bw, precision=hi)
        return jnp.einsum('nho,hp->npo', t, bh, precision=hi)

    mu_x, mu_y = blur(x), blur(y)
    e_xx, e_yy, e_xy = blur(x * x), blur(y * y), blur(x * y)
    c1 = (0.01 * data_range) ** 2
    c2 = (0.03 * data_range) ** 2
    sig_x, sig_y, sig_xy = e_xx - mu_x ** 2, e_yy - mu_y ** 2, e_xy - mu_x * mu_y
    ssim = ((2 * mu_x * mu_y + c1) * (2 * sig_xy + c2) /
            ((mu_x ** 2 + mu_y ** 2 + c1) * (sig_x + sig_y + c2)))
    return (1.0 - jnp.mean(ssim)) / 2.0


if __name__ == "__main__":
    key = jax.random.PRNGKey(0)
    kp, kt, kp2, kt2 = jax.random.split(key, 4)

    # Main config: batch=2, channels=4, spatial=16 (grid has 4 blocks of 2 images).
    N, C, H, W = 2, 4, 16, 16
    data_range = 1.0
    preds = jax.random.uniform(kp, (N, C, H, W), dtype=jnp.float32)
    target = jnp.clip(
        preds + 0.1 * jax.random.normal(kt, (N, C, H, W), dtype=jnp.float32),
        0.0, 1.0)

    loss = dssim_loss(preds, target, data_range=data_range)
    jax.block_until_ready(loss)
    ref = _dssim_reference(preds, target, data_range=data_range)
    assert abs(float(loss) - float(ref)) < 1e-2, (float(loss), float(ref))

    # Ragged-tail config (NC=5 not divisible by TB=2): exercises the
    # no-HBM-padding tail path with the in-kernel per-image mask.
    N2, C2, H2, W2 = 1, 5, 16, 16
    p2 = jax.random.uniform(kp2, (N2, C2, H2, W2), dtype=jnp.float32)
    t2 = jnp.clip(
        p2 + 0.05 * jax.random.normal(kt2, (N2, C2, H2, W2), dtype=jnp.float32),
        0.0, 1.0)
    l2 = dssim_loss(p2, t2, data_range=data_range)
    jax.block_until_ready(l2)
    r2 = _dssim_reference(p2, t2, data_range=data_range)
    assert abs(float(l2) - float(r2)) < 1e-2, (float(l2), float(r2))

    print("KERNEL_OK")
</pallas_src>

<mosaic_0001>
module attributes {stable_mosaic.version = 11 : i64} {
  func.func @_ssim_partial_kernel(%arg0: i32, %arg1: memref<2x16x16xf32, #tpu.memory_space<vmem>>, %arg2: memref<2x16x16xf32, #tpu.memory_space<vmem>>, %arg3: memref<16x128xf32, #tpu.memory_space<vmem>>, %arg4: memref<6x16xf32, #tpu.memory_space<vmem>>, %arg5: memref<1x128xf32, #tpu.memory_space<vmem>>, %arg6: memref<1x1x128xf32, #tpu.memory_space<vmem>>) attributes {dimension_semantics = [#tpu.dimension_semantics<parallel>], iteration_bounds = array<i64: 4>, scalar_prefetch = 0 : i64, scratch_operands = 0 : i64, tpu.core_type = #tpu.core_type<tc>, window_params = [{transform_indices = @transform_0, window_bounds = array<i64: 2, 16, 16>}, {transform_indices = @transform_1, window_bounds = array<i64: 2, 16, 16>}, {pipeline_mode = #tpu.pipeline_mode<synchronous>, transform_indices = @transform_2, window_bounds = array<i64: 16, 128>}, {pipeline_mode = #tpu.pipeline_mode<synchronous>, transform_indices = @transform_3, window_bounds = array<i64: 6, 16>}, {pipeline_mode = #tpu.pipeline_mode<synchronous>, transform_indices = @transform_4, window_bounds = array<i64: 1, 128>}, {transform_indices = @transform_5, window_bounds = array<i64: 1, 1, 128>}]} {
    %c0 = arith.constant 0 : index
    %c0_0 = arith.constant 0 : index
    %c0_1 = arith.constant 0 : index
    %0 = vector.load %arg1[%c0, %c0_0, %c0_1] : memref<2x16x16xf32, #tpu.memory_space<vmem>>, vector<2x16x16xf32>
    %c0_2 = arith.constant 0 : index
    %c0_3 = arith.constant 0 : index
    %c0_4 = arith.constant 0 : index
    %1 = vector.load %arg2[%c0_2, %c0_3, %c0_4] : memref<2x16x16xf32, #tpu.memory_space<vmem>>, vector<2x16x16xf32>
    %c0_5 = arith.constant 0 : index
    %c0_6 = arith.constant 0 : index
    %2 = vector.load %arg3[%c0_5, %c0_6] : memref<16x128xf32, #tpu.memory_space<vmem>>, vector<16x128xf32>
    %c0_7 = arith.constant 0 : index
    %c0_8 = arith.constant 0 : index
    %3 = vector.load %arg4[%c0_7, %c0_8] : memref<6x16xf32, #tpu.memory_space<vmem>>, vector<6x16xf32>
    %4 = vector.shape_cast %3 : vector<6x16xf32> to vector<1x6x16xf32>
    %5 = vector.broadcast %4 : vector<1x6x16xf32> to vector<2x6x16xf32>
    %6 = vector.shape_cast %0 : vector<2x16x16xf32> to vector<32x16xf32>
    %cst = arith.constant dense<0.000000e+00> : vector<32x128xf32>
    %7 = tpu.matmul %6, %2, %cst {dimension_numbers = #tpu.dot_dimension_numbers<[1], [0], [0], [1], [0, 0, 1, 1], [], []>} : vector<32x16xf32>, vector<16x128xf32>, vector<32x128xf32> -> vector<32x128xf32>
    %8 = vector.shape_cast %7 : vector<32x128xf32> to vector<2x16x128xf32>
    "tpu.trace_start"() <{level = 10 : i32, message = "bph,bhw->bpw"}> : () -> ()
    %cst_9 = arith.constant dense<0.000000e+00> : vector<2x6x128xf32>
    %9 = tpu.matmul %5, %8, %cst_9 {dimension_numbers = #tpu.dot_dimension_numbers<[2], [1], [1], [2], [0, 0, 0, 1, 1, 2], [0], [0]>} : vector<2x6x16xf32>, vector<2x16x128xf32>, vector<2x6x128xf32> -> vector<2x6x128xf32>
    "tpu.trace_stop"() : () -> ()
    %10 = vector.shape_cast %1 : vector<2x16x16xf32> to vector<32x16xf32>
    %cst_10 = arith.constant dense<0.000000e+00> : vector<32x128xf32>
    %11 = tpu.matmul %10, %2, %cst_10 {dimension_numbers = #tpu.dot_dimension_numbers<[1], [0], [0], [1], [0, 0, 1, 1], [], []>} : vector<32x16xf32>, vector<16x128xf32>, vector<32x128xf32> -> vector<32x128xf32>
    %12 = vector.shape_cast %11 : vector<32x128xf32> to vector<2x16x128xf32>
    "tpu.trace_start"() <{level = 10 : i32, message = "bph,bhw->bpw"}> : () -> ()
    %cst_11 = arith.constant dense<0.000000e+00> : vector<2x6x128xf32>
    %13 = tpu.matmul %5, %12, %cst_11 {dimension_numbers = #tpu.dot_dimension_numbers<[2], [1], [1], [2], [0, 0, 0, 1, 1, 2], [0], [0]>} : vector<2x6x16xf32>, vector<2x16x128xf32>, vector<2x6x128xf32> -> vector<2x6x128xf32>
    "tpu.trace_stop"() : () -> ()
    %14 = arith.mulf %0, %0 : vector<2x16x16xf32>
    %15 = vector.shape_cast %14 : vector<2x16x16xf32> to vector<32x16xf32>
    %cst_12 = arith.constant dense<0.000000e+00> : vector<32x128xf32>
    %16 = tpu.matmul %15, %2, %cst_12 {dimension_numbers = #tpu.dot_dimension_numbers<[1], [0], [0], [1], [0, 0, 1, 1], [], []>} : vector<32x16xf32>, vector<16x128xf32>, vector<32x128xf32> -> vector<32x128xf32>
    %17 = vector.shape_cast %16 : vector<32x128xf32> to vector<2x16x128xf32>
    "tpu.trace_start"() <{level = 10 : i32, message = "bph,bhw->bpw"}> : () -> ()
    %cst_13 = arith.constant dense<0.000000e+00> : vector<2x6x128xf32>
    %18 = tpu.matmul %5, %17, %cst_13 {dimension_numbers = #tpu.dot_dimension_numbers<[2], [1], [1], [2], [0, 0, 0, 1, 1, 2], [0], [0]>} : vector<2x6x16xf32>, vector<2x16x128xf32>, vector<2x6x128xf32> -> vector<2x6x128xf32>
    "tpu.trace_stop"() : () -> ()
    %19 = arith.mulf %1, %1 : vector<2x16x16xf32>
    %20 = vector.shape_cast %19 : vector<2x16x16xf32> to vector<32x16xf32>
    %cst_14 = arith.constant dense<0.000000e+00> : vector<32x128xf32>
    %21 = tpu.matmul %20, %2, %cst_14 {dimension_numbers = #tpu.dot_dimension_numbers<[1], [0], [0], [1], [0, 0, 1, 1], [], []>} : vector<32x16xf32>, vector<16x128xf32>, vector<32x128xf32> -> vector<32x128xf32>
    %22 = vector.shape_cast %21 : vector<32x128xf32> to vector<2x16x128xf32>
    "tpu.trace_start"() <{level = 10 : i32, message = "bph,bhw->bpw"}> : () -> ()
    %cst_15 = arith.constant dense<0.000000e+00> : vector<2x6x128xf32>
    %23 = tpu.matmul %5, %22, %cst_15 {dimension_numbers = #tpu.dot_dimension_numbers<[2], [1], [1], [2], [0, 0, 0, 1, 1, 2], [0], [0]>} : vector<2x6x16xf32>, vector<2x16x128xf32>, vector<2x6x128xf32> -> vector<2x6x128xf32>
    "tpu.trace_stop"() : () -> ()
    %24 = arith.mulf %0, %1 : vector<2x16x16xf32>
    %25 = vector.shape_cast %24 : vector<2x16x16xf32> to vector<32x16xf32>
    %cst_16 = arith.constant dense<0.000000e+00> : vector<32x128xf32>
    %26 = tpu.matmul %25, %2, %cst_16 {dimension_numbers = #tpu.dot_dimension_numbers<[1], [0], [0], [1], [0, 0, 1, 1], [], []>} : vector<32x16xf32>, vector<16x128xf32>, vector<32x128xf32> -> vector<32x128xf32>
    %27 = vector.shape_cast %26 : vector<32x128xf32> to vector<2x16x128xf32>
    "tpu.trace_start"() <{level = 10 : i32, message = "bph,bhw->bpw"}> : () -> ()
    %cst_17 = arith.constant dense<0.000000e+00> : vector<2x6x128xf32>
    %28 = tpu.matmul %5, %27, %cst_17 {dimension_numbers = #tpu.dot_dimension_numbers<[2], [1], [1], [2], [0, 0, 0, 1, 1, 2], [0], [0]>} : vector<2x6x16xf32>, vector<2x16x128xf32>, vector<2x6x128xf32> -> vector<2x6x128xf32>
    "tpu.trace_stop"() : () -> ()
    %29 = arith.mulf %9, %9 : vector<2x6x128xf32>
    %30 = arith.mulf %13, %13 : vector<2x6x128xf32>
    %31 = arith.mulf %9, %13 : vector<2x6x128xf32>
    %32 = arith.subf %18, %29 : vector<2x6x128xf32>
    %33 = arith.subf %23, %30 : vector<2x6x128xf32>
    %34 = arith.subf %28, %31 : vector<2x6x128xf32>
    %cst_18 = arith.constant 2.000000e+00 : f32
    %35 = vector.broadcast %cst_18 : f32 to vector<2x6x128xf32>
    %36 = arith.mulf %35, %31 : vector<2x6x128xf32>
    %cst_19 = arith.constant 9.99999974E-5 : f32
    %37 = vector.broadcast %cst_19 : f32 to vector<2x6x128xf32>
    %38 = arith.addf %36, %37 : vector<2x6x128xf32>
    %cst_20 = arith.constant 2.000000e+00 : f32
    %39 = vector.broadcast %cst_20 : f32 to vector<2x6x128xf32>
    %40 = arith.mulf %39, %34 : vector<2x6x128xf32>
    %cst_21 = arith.constant 8.99999984E-4 : f32
    %41 = vector.broadcast %cst_21 : f32 to vector<2x6x128xf32>
    %42 = arith.addf %40, %41 : vector<2x6x128xf32>
    %43 = arith.mulf %38, %42 : vector<2x6x128xf32>
    %44 = arith.addf %29, %30 : vector<2x6x128xf32>
    %cst_22 = arith.constant 9.99999974E-5 : f32
    %45 = vector.broadcast %cst_22 : f32 to vector<2x6x128xf32>
    %46 = arith.addf %44, %45 : vector<2x6x128xf32>
    %47 = arith.addf %32, %33 : vector<2x6x128xf32>
    %cst_23 = arith.constant 8.99999984E-4 : f32
    %48 = vector.broadcast %cst_23 : f32 to vector<2x6x128xf32>
    %49 = arith.addf %47, %48 : vector<2x6x128xf32>
    %50 = arith.mulf %46, %49 : vector<2x6x128xf32>
    %51 = tpu.reciprocal %50 {approx = true} : vector<2x6x128xf32> -> vector<2x6x128xf32>
    %52 = arith.mulf %43, %51 : vector<2x6x128xf32>
    %cst_24 = arith.constant dense<0.000000e+00> : vector<2x128xf32>
    %53 = vector.multi_reduction <add>, %52, %cst_24 [1] : vector<2x6x128xf32> to vector<2x128xf32>
    %54 = tpu.iota {dimensions = array<i32: 0>} : vector<2x128xi32>
    %c2_i32 = arith.constant 2 : i32
    %55 = arith.muli %arg0, %c2_i32 : i32
    %56 = vector.broadcast %55 : i32 to vector<2x128xi32>
    %57 = arith.addi %54, %56 : vector<2x128xi32>
    %c8_i32 = arith.constant 8 : i32
    %58 = vector.broadcast %c8_i32 : i32 to vector<2x128xi32>
    %59 = arith.cmpi slt, %57, %58 : vector<2x128xi32>
    %cst_25 = arith.constant 0.000000e+00 : f32
    %60 = vector.broadcast %cst_25 : f32 to vector<2x128xf32>
    %61 = arith.select %59, %53, %60 : vector<2x128xi1>, vector<2x128xf32>
    %cst_26 = arith.constant dense<0.000000e+00> : vector<128xf32>
    %62 = vector.multi_reduction <add>, %61, %cst_26 [0] : vector<2x128xf32> to vector<128xf32>
    %63 = vector.shape_cast %62 : vector<128xf32> to vector<1x128xf32>
    %c0_27 = arith.constant 0 : index
    %c0_28 = arith.constant 0 : index
    %64 = vector.load %arg5[%c0_27, %c0_28] : memref<1x128xf32, #tpu.memory_space<vmem>>, vector<1x128xf32>
    %65 = arith.mulf %63, %64 : vector<1x128xf32>
    %c0_29 = arith.constant 0 : index
    %c0_30 = arith.constant 0 : index
    %c0_31 = arith.constant 0 : index
    %66 = vector.load %arg6[%c0_29, %c0_30, %c0_31] : memref<1x1x128xf32, #tpu.memory_space<vmem>>, vector<1x1x128xf32>
    %67 = vector.shape_cast %66 : vector<1x1x128xf32> to vector<1x128xf32>
    %68 = vector.shape_cast %65 : vector<1x128xf32> to vector<1x1x128xf32>
    tpu.vector_store %arg6[%c0_29, %c0_30, %c0_31], %68 {strides = array<i32>} : memref<1x1x128xf32, #tpu.memory_space<vmem>>, vector<1x1x128xf32>,
    return
  }
  func.func @transform_0(%arg0: i32) -> (i32, i32, i32) {
    %c0_i32 = arith.constant 0 : i32
    %c0_i32_0 = arith.constant 0 : i32
    %c0_i32_1 = arith.constant 0 : i32
    return %arg0, %c0_i32, %c0_i32_0 : i32, i32, i32
  }
  func.func @transform_1(%arg0: i32) -> (i32, i32, i32) {
    %c0_i32 = arith.constant 0 : i32
    %c0_i32_0 = arith.constant 0 : i32
    %c0_i32_1 = arith.constant 0 : i32
    return %arg0, %c0_i32, %c0_i32_0 : i32, i32, i32
  }
  func.func @transform_2(%arg0: i32) -> (i32, i32) {
    %c0_i32 = arith.constant 0 : i32
    %c0_i32_0 = arith.constant 0 : i32
    %c0_i32_1 = arith.constant 0 : i32
    return %c0_i32, %c0_i32_0 : i32, i32
  }
  func.func @transform_3(%arg0: i32) -> (i32, i32) {
    %c0_i32 = arith.constant 0 : i32
    %c0_i32_0 = arith.constant 0 : i32
    %c0_i32_1 = arith.constant 0 : i32
    return %c0_i32, %c0_i32_0 : i32, i32
  }
  func.func @transform_4(%arg0: i32) -> (i32, i32) {
    %c0_i32 = arith.constant 0 : i32
    %c0_i32_0 = arith.constant 0 : i32
    %c0_i32_1 = arith.constant 0 : i32
    return %c0_i32, %c0_i32_0 : i32, i32
  }
  func.func @transform_5(%arg0: i32) -> (i32, i32, i32) {
    %c0_i32 = arith.constant 0 : i32
    %c0_i32_0 = arith.constant 0 : i32
    %c0_i32_1 = arith.constant 0 : i32
    return %arg0, %c0_i32, %c0_i32_0 : i32, i32, i32
  }
}

</mosaic_0001>

<bundles_post_ra>
// kernel: tpu_custom_call.1
= control target key start
LH: loop header
LB: loop body
LE: loop exit
PB: predicated region body
PF: predicated region fallthrough
CT: control target
= control target key end

     0   :  { %s2577_s0 = inlined_call_operand.hbm [shape: f32[8,16,16], index: 0, kind: input, shape index: {}]   ;;  %s2578_s1 = inlined_call_operand.hbm [shape: f32[8,16,16], index: 1, kind: input, shape index: {}]   ;;  %s2579_s2 = inlined_call_operand.hbm [shape: f32[16,128], index: 2, kind: input, shape index: {}]   ;;  %s2580_s3 = inlined_call_operand.vmem [shape: f32[6,16], index: 3, kind: input, shape index: {}]   ;;  %s2581_s4 = inlined_call_operand.vmem [shape: f32[1,128], index: 4, kind: input, shape index: {}]   ;;  %s2582_s5 = inlined_call_operand.hbm [shape: f32[4,1,128], index: 5, kind: output, shape index: {}]  }
   0x1   :  { %2591 = sst [smem:[#allocation15_spill]] %s2577_s0 }
   0x2   :  { %2592 = sst [smem:[#allocation16_spill]] %s2579_s2 }
   0x3   :  { %10 = vsyncpa [#allocation3], 0 }
   0x4   :  { %12 = vsyncpa [#allocation3 + $0x1], 0 }
   0x5   :  { %13 = vsyncpa [#allocation6], 0 }
   0x6   :  { %15 = vsyncpa [#allocation6 + $0x1], 0 }
   0x7   :  { %16 = vsyncpa [#allocation4], 0 }
   0x8   :  { %18 = vsyncpa [#allocation4 + $0x1], 0  ;;  %s2255_s18 = smov 0   ;;  %s2257_s19 = smov 0  }
   0x9   :  { %s2259_s20 = smov 0   ;;  %s2261_s21 = smov 0  }
   0xa LB: > { %2593 = sst [smem:[#allocation13_spill]] %s2210_s20  ;;  %s2276_s22 = sadd.s32 4294967295, %s2214_s21   ;;  %s2214_s21 = sphi %s2261_s21, %s2615_s21   ;;  %s2210_s20 = sphi %s2259_s20, %s2612_s20   ;;  %s2206_s19 = sphi %s2257_s19, %s2614_s19   ;;  %s2202_s18 = sphi %s2255_s18, %s2613_s18  }
   0xb   : > { %s1697_s23 = sadd.s32 4294967294, %s2214_s21   ;;  %p44_p0 = scmp.ne.s32.totalorder %s2206_s19, %s2202_s18 }
   0xc   : > { %p2583_p1 = scmp.eq.s32.totalorder %s2276_s22, 0  ;;  %p163_p3 = scmp.eq.s32.totalorder %s1697_s23, 3 }
   0xd   : > { %p1698_p5 = scmp.ge.s32.totalorder %s2214_s21, 1  ;;  %p170_p7 = scmp.lt.s32.totalorder %s2214_s21, 5 }
   0xe   : > { %p2285_p4 = por %p2583_p1, %p44_p0  ;;  %p2290_p6 = por %p163_p3, %p44_p0 }
   0xf   : > { %p2295_p8 = pnand %p1698_p5, %p170_p7  ;;  %s2216_s27 = smov [#allocation7]  }
  0x10   : > { %s2594_s24 = scalar_select %p2285_p4, 1, 0 }
  0x11   : > { %s2595_s25 = scalar_select %p2290_p6, 1, 0 }
  0x12   : > { %s2596_s26 = scalar_select %p2295_p8, 1, 0 }
  0x13   : > { %s182_s28 = sshll.u32 %s2216_s27, 4  ;;  %p1991_p9 = pneg %p2295_p8  ;;  %s183_s28 = int_to_ptr.vmem [resolvable:$true] %s182_s28 }
  0x14   : > { %s2308_s30 = sadd.s32 1, %s2214_s21   ;;  %s31_s6 = sadd.s32 1, %s2210_s20 }
  0x15   : > { %p2303_p10 = pnand %p1991_p9, %p2583_p1  ;;  %s28_s7 = ssub.s32 %s2214_s21, %s2308_s30 }
  0x16   : > { %s2598_s2 = sld [smem:[#allocation16_spill]] }
  0x17   : > { %p2054_p12 = pneg %p2303_p10 }
  0x1c   : > { %s2052_s10 = scalar_lea.hbm %s2598_s2, 256 }
  0x1d   : > { %p2053_p11 = scmp.ne.s32.totalorder %s2598_s2, %s2052_s10  ;;  %p2059_p3 = scmp.lt.u32.totalorder %s2052_s10, %s2598_s2 }
  0x1f   : > { %p2055_p13 = pnand %p2054_p12, %p2053_p11 }
  0x21   : > { %p2056_p0 = pneg %p2055_p13 }
  0x23   : > { %p2061_p5 = pnand %p2059_p3, %p2056_p0 }
  0x25   : > { %2064 = shalt.err (!%p2061_p5)
}
  0x26   : > { %s2065_s15 = scalar_lea.vmem %s183_s28, 256  ;;  %p2073_p2 = scmp.lt.s32.totalorder %s183_s28, %s183_s28 }
  0x27   : > { %p2066_p7 = scmp.ne.s32.totalorder %s183_s28, %s2065_s15  ;;  %p2074_p6 = scmp.lt.s32.totalorder %s2065_s15, %s2065_s15 }
  0x29   : > { %p2068_p9 = pnand %p2066_p7, %p2054_p12  ;;  %p2075_p4 = por %p2074_p6, %p2073_p2 }
  0x2b   : > { %p2069_p1 = pneg %p2068_p9 }
  0x2d   : > { %p2076_p8 = pnand %p2075_p4, %p2069_p1 }
  0x2f   : > { %2079 = shalt.err (!%p2076_p8)
}
  0x30   : > { %s2586_s16 = smov 128   ;;  %s2588_s17 = smov 8  }
  0x31   : > { %1994 = dma.hbm_to_vmem [thread:$0]  (!%p2303_p10), %s2598_s2, 256, %s183_s28, [#allocation6], %s2586_s16, %s2586_s16, %s2588_s17  }
  0x32   : > { %p29_p1 = scmp.eq.s32.totalorder %s28_s7, 0  ;;  %p38_p2 = scmp.ne.s32.totalorder %s2210_s20, %s2206_s19 }
  0x33   : > { %p39_p4 = scmp.eq.s32.totalorder %s2214_s21, 0  ;;  %p2007_p6 = scmp.lt.s32.totalorder %s2214_s21, 4 }
  0x34   : > { %s2337_s8 = scalar_select %p29_p1, %s2210_s20, %s31_s6  }
  0x35   : > { %p40_p8 = por %p39_p4, %p38_p2  ;;  %p2600_p11 = scmp.eq.s32.totalorder %s2276_s22, 3 }
  0x36   : > { %2599 = sst [smem:[#allocation14_spill]] %s2337_s8  ;;  %s202_s29 = sand.u32 1, %s2210_s20  }
  0x37   : > { %p2341_p12 = por %p2600_p11, %p38_p2  ;;  %s1748_s10 = sshll.u32 %s2214_s21, 9 }
  0x38   : > { %s2347_s11 = sshll.u32 %s202_s29, 5  ;;  %s2602_s0 = sld [smem:[#allocation15_spill]] }
  0x39   : > { %s206_s6 = scalar_lea.vmem [#allocation2], %s2347_s11  ;;  %p2355_p10 = pnand %p2007_p6, %p40_p8 }
  0x3a   : > { %s214_s7 = sshll.u32 %s206_s6, 4  ;;  %s2364_s27 = scalar_lea.hbm %s2578_s1, %s1748_s10  ;;  %s2359_s7 = int_to_ptr.vmem [resolvable:$true] %s214_s7 }
  0x3b   : > { %s2366_s12 = scalar_lea.sflag [#allocation3], %s202_s29  ;;  %p2082_p0 = pneg %p2355_p10 }
  0x3e   : > { %s2352_s28 = scalar_lea.hbm %s2602_s0, %s1748_s10  ;;  %s2085_s17 = scalar_lea.hbm %s2602_s0, 2048 }
  0x3f   : > { %s2080_s13 = scalar_lea.hbm %s2352_s28, 512  ;;  %p2086_p7 = scmp.lt.u32.totalorder %s2352_s28, %s2602_s0 }
  0x40   : > { %p2081_p13 = scmp.ne.s32.totalorder %s2352_s28, %s2080_s13  ;;  %p2087_p9 = scmp.lt.u32.totalorder %s2085_s17, %s2080_s13 }
  0x41   : > { %p2089_p2 = scmp.lt.u32.totalorder %s2080_s13, %s2352_s28 }
  0x42   : > { %p2083_p3 = pnand %p2082_p0, %p2081_p13  ;;  %p2088_p1 = por %p2087_p9, %p2086_p7 }
  0x44   : > { %p2084_p5 = pneg %p2083_p3  ;;  %p2090_p4 = por %p2089_p2, %p2088_p1 }
  0x46   : > { %p2091_p6 = pnand %p2090_p4, %p2084_p5 }
  0x48   : > { %2094 = shalt.err (!%p2091_p6)
}
  0x49   : > { %s2095_s29 = scalar_lea.vmem %s2359_s7, 512  ;;  %s2219_s16 = smov [#allocation2]  }
  0x4a   : > { %p2096_p8 = scmp.ne.s32.totalorder %s2359_s7, %s2095_s29  ;;  %s2100_s10 = sshll.u32 %s2219_s16, 4  ;;  %s2101_s10 = int_to_ptr.vmem [resolvable:$false] %s2100_s10 }
  0x4b   : > { %s2102_s2 = scalar_lea.vmem %s2101_s10, 1024  ;;  %p2103_p3 = scmp.lt.s32.totalorder %s2359_s7, %s2101_s10 }
  0x4c   : > { %p2098_p11 = pnand %p2096_p8, %p2082_p0  ;;  %p2104_p7 = scmp.lt.s32.totalorder %s2102_s2, %s2095_s29 }
  0x4e   : > { %p2099_p13 = pneg %p2098_p11  ;;  %p2105_p9 = por %p2104_p7, %p2103_p3 }
  0x50   : > { %p2106_p1 = pnand %p2105_p9, %p2099_p13 }
  0x52   : > { %2109 = shalt.err (!%p2106_p1)
}
  0x53   : > { %s2604_s17 = smov 8   ;;  %s2605_s8 = smov 128  }
  0x54   : > { %1998 = dma.hbm_to_vmem [thread:$0]  (!%p2355_p10), %s2352_s28, 512, %s2359_s7, %s2366_s12, %s2605_s8, %s2605_s8, %s2604_s17  }
  0x55   : > { %s228_s15 = scalar_lea.vmem [#allocation5], %s2347_s11  ;;  %s224_s13 = sand.u32 1, %s2214_s21  }
  0x56   : > { %s236_s23 = sshll.u32 %s228_s15, 4  ;;  %s2401_s6 = scalar_lea.sflag [#allocation6], %s224_s13  ;;  %s2399_s23 = int_to_ptr.vmem [resolvable:$true] %s236_s23 }
  0x57   : > { %s2110_s29 = scalar_lea.hbm %s2364_s27, 512  ;;  %s2115_s2 = scalar_lea.hbm %s2578_s1, 2048 }
  0x58   : > { %p2111_p5 = scmp.ne.s32.totalorder %s2364_s27, %s2110_s29  ;;  %p2116_p6 = scmp.lt.u32.totalorder %s2364_s27, %s2578_s1 }
  0x59   : > { %p2117_p8 = scmp.lt.u32.totalorder %s2115_s2, %s2110_s29  ;;  %p2119_p13 = scmp.lt.u32.totalorder %s2110_s29, %s2364_s27 }
  0x5a   : > { %p2113_p2 = pnand %p2111_p5, %p2082_p0 }
  0x5b   : > { %p2118_p11 = por %p2117_p8, %p2116_p6 }
  0x5c   : > { %p2114_p4 = pneg %p2113_p2 }
  0x5d   : > { %p2120_p3 = por %p2119_p13, %p2118_p11 }
  0x5f   : > { %p2121_p7 = pnand %p2120_p3, %p2114_p4 }
  0x61   : > { %2124 = shalt.err (!%p2121_p7)
}
  0x62   : > { %s2125_s11 = scalar_lea.vmem %s2399_s23, 512  ;;  %s2220_s28 = smov [#allocation5]  }
  0x63   : > { %p2126_p9 = scmp.ne.s32.totalorder %s2399_s23, %s2125_s11  ;;  %s2130_s7 = sshll.u32 %s2220_s28, 4  ;;  %s2131_s7 = int_to_ptr.vmem [resolvable:$false] %s2130_s7 }
  0x64   : > { %s2132_s0 = scalar_lea.vmem %s2131_s7, 1024  ;;  %p2133_p2 = scmp.lt.s32.totalorder %s2399_s23, %s2131_s7 }
  0x65   : > { %p2128_p1 = pnand %p2126_p9, %p2082_p0  ;;  %p2134_p6 = scmp.lt.s32.totalorder %s2132_s0, %s2125_s11 }
  0x67   : > { %p2129_p5 = pneg %p2128_p1  ;;  %p2135_p8 = por %p2134_p6, %p2133_p2 }
  0x69   : > { %p2136_p11 = pnand %p2135_p8, %p2129_p5 }
  0x6b   : > { %2139 = shalt.err (!%p2136_p11)
}
  0x6c   : > { %2001 = dma.hbm_to_vmem [thread:$0]  (!%p2355_p10), %s2364_s27, 512, %s2399_s23, %s2401_s6, %s2605_s8, %s2605_s8, %s2604_s17  }
  0x6d   : > { %p2606_p0 = scmp.ne.s32.totalorder %s2596_s26, 0 }
  0x6e   : > { %s2433_s20 = sand.u32 (!%p2606_p0), 1, %s2206_s19   ;;  %p2607_p4 = scmp.ne.s32.totalorder (!%p2606_p0), %s2594_s24, 0 }
  0x6f   : > { %248 = sbr.rel (%p2606_p0) target bundleno = 655 (0x28f), region = 40  ;;  %s1710_s12 = sshll.u32 (!%p2606_p0), %s2433_s20, 5 }
  0x70   : > { %s251_s15 = scalar_lea.sflag (!%p2606_p0), [#allocation3], %s2433_s20  ;;  %s254_s13 = scalar_lea.vmem (!%p2606_p0), [#allocation2], %s1710_s12 }
  0x76   : > { %2185 = dma.done.wait (%p2607_p4), %s251_s15, 512  }
  0x77   : > { %2187 = vsyncadd (%p2607_p4), %s251_s15, 4294966784  ;;  %s259_s14 = sand.u32 1, %s2276_s22   ;;  %s263_s26 = scalar_lea.vmem [#allocation5], %s1710_s12 }
  0x78   : > { %s260_s27 = scalar_lea.sflag [#allocation6], %s259_s14 }
  0x79   : > { %2189 = dma.done.wait (%p2607_p4), %s260_s27, 512  }
  0x7a   : > { %2191 = vsyncadd (%p2607_p4), %s260_s27, 4294966784  ;;  %p2608_p10 = scmp.eq.s32.totalorder %s2276_s22, 0 }
  0x7c   : > { %2193 = dma.done.wait (%p2608_p10), [#allocation6], 256   ;;  %p2609_p13 = pmov %p2608_p10 }
  0x7d   : > { %vm311_vm0 = vcmask 130048   ;;  %v308_v0 = vld [vmem:[#allocation7] sm:$0xff]  ;;  %v309_v1 = vld [vmem:[#allocation7 + $0x8] sm:$0xff]  ;;  %v302_v5 = vld [vmem:[%s254_s13 + $0x10] sm:$0xff]  ;;  %v2221_v23 = vmov 0.0|0.0   ;;  %vm2222_vm1 = vmmov 0  }
  0x7e   : > { %2195 = vsyncadd (%p2609_p13), [#allocation6], 4294967040  ;;  %v300_v2 = vld [vmem:[%s254_s13] sm:$0xff]  ;;  %v1931_v3 = vpack.c.bf16 %v309_v1, %v308_v0  ;;  %v301_v4 = vld [vmem:[%s254_s13 + $0x8] sm:$0xff]  ;;  %v791_v13 = vmul.f32 %v302_v5, %v302_v5  ;;  %1935 = vmatprep.subr.bf16.mxu1 %v2221_v23  ;;  %v2223_v24 = vmov 0.0   ;;  %vm1548_vm2 = vcmask 1045504  }
  0x7f   : > { %1815 = vmatprep.mubr.msk.f32.mxu0 %vm311_vm0, %v300_v2  ;;  %v303_v6 = vld [vmem:[%s254_s13 + $0x18] sm:$0xff]  ;;  %v304_v7 = vld [vmem:[%s263_s26] sm:$0xff]  ;;  %v305_v8 = vld [vmem:[%s263_s26 + $0x8] sm:$0xff]  ;;  %v789_v10 = vmul.f32 %v300_v2, %v300_v2  ;;  %v790_v12 = vmul.f32 %v301_v4, %v301_v4  ;;  %1825 = vmatprep.mubr.msk.f32.mxu1 %vm2222_vm1, %v2223_v24  ;;  %s1743_s8 = sshll.u32 %s2276_s22, 1  ;;  %vm1571_vm3 = vcmask 1041409   ;;  %vm1575_vm5 = vcmask 1041408  }
  0x80   : > { %1932 = vmatprep.subr.bf16.mxu0 %v1931_v3  ;;  %v306_v9 = vld [vmem:[%s263_s26 + $0x10] sm:$0xff]  ;;  %v307_v11 = vld [vmem:[%s263_s26 + $0x18] sm:$0xff]  ;;  %v792_v14 = vmul.f32 %v303_v6, %v303_v6  ;;  %v1030_v15 = vmul.f32 %v304_v7, %v304_v7  ;;  %v1031_v16 = vmul.f32 %v305_v8, %v305_v8  ;;  %v1271_v19 = vmul.f32 %v304_v7, %v300_v2  ;;  %v2476_v29 = vld [vmem:[%s2580_s3] sm:$0x3f]  ;;  %s1744_s29 = sshll.u32 %s2276_s22, 4  ;;  %s297_s16 = scalar_lea.vmem [#allocation8], %s2433_s20 }
  0x81   : > { %1934 = vmatpush3.bf16.msra.mxu0 %v1931_v3  ;;  %v1032_v17 = vmul.f32 %v306_v9, %v306_v9  ;;  %v1033_v18 = vmul.f32 %v307_v11, %v307_v11  ;;  %v1272_v20 = vmul.f32 %v305_v8, %v301_v4  ;;  %v1273_v21 = vmul.f32 %v306_v9, %v302_v5  ;;  %s1599_s10 = sshll.u32 %s297_s16, 4  ;;  %s2534_s28 = scalar_lea.hbm %s2582_s5, %s1744_s29  ;;  %s2536_s10 = int_to_ptr.vmem [resolvable:$true] %s1599_s10 }
  0x82   : > { %1942 = vmatprep.subr.bf16.mxu0 %v1931_v3  ;;  %v1274_v22 = vmul.f32 %v307_v11, %v303_v6  ;;  %s1587_s7 = scalar_lea.sflag [#allocation4], %s2433_s20  ;;  %s2140_s0 = scalar_lea.vmem %s2536_s10, 16 }
  0x83   : > { %p2141_p3 = scmp.ne.s32.totalorder %s2536_s10, %s2140_s0  ;;  %s2224_s22 = smov [#allocation8]  }
  0x84   : > { %1816 = vmatmul.mubr.msk.f32.vlgmr.msra.gmra.mrb[0].mxu0 %vm311_vm0, %v301_v4  ;;  %s2144_s12 = sshll.u32 %s2224_s22, 4  ;;  %s2145_s12 = int_to_ptr.vmem [resolvable:$false] %s2144_s12 }
  0x85   : > { %1944 = vmatpush3.bf16.msra.mxu0 %v1931_v3  ;;  %1818 = vmatprep.mubr.msk.f32.mxu0 %vm311_vm0, %v302_v5  ;;  %p2142_p7 = pnand %p2141_p3, %p2341_p12  ;;  %s2146_s15 = scalar_lea.vmem %s2145_s12, 32 }
  0x86   : > { %1952 = vmatprep.subr.bf16.mxu0 %v1931_v3  ;;  %p2147_p1 = scmp.lt.s32.totalorder %s2536_s10, %s2145_s12  ;;  %p2148_p5 = scmp.lt.s32.totalorder %s2146_s15, %s2140_s0 }
  0x87   : > { %p2143_p9 = pneg %p2142_p7 }
  0x88   : > { %1819 = vmatmul.mubr.msk.f32.gmra.mrb[2].mxu0 %vm311_vm0, %v303_v6  ;;  %p2149_p2 = por %p2148_p5, %p2147_p1 }
  0x89   : > { %1839 = vmatprep.mubr.msk.f32.mxu0 %vm311_vm0, %v304_v7 }
  0x8a   : > { %p2150_p6 = pnand %p2149_p2, %p2143_p9 }
  0x8c   : > { %1840 = vmatmul.mubr.msk.f32.vlgmr.msra.gmra.mrb[4].mxu0 %vm311_vm0, %v305_v8 }
  0x8d   : > { %1954 = vmatpush3.bf16.msra.mxu0 %v1931_v3  ;;  %1842 = vmatprep.mubr.msk.f32.mxu0 %vm311_vm0, %v306_v9 }
  0x8e   : > { %1962 = vmatprep.subr.bf16.mxu0 %v1931_v3 }
  0x90   : > { %1843 = vmatmul.mubr.msk.f32.gmra.mrb[6].mxu0 %vm311_vm0, %v307_v11 }
  0x91   : > { %1863 = vmatprep.mubr.msk.f32.mxu0 %vm311_vm0, %v789_v10 }
  0x94   : > { %1864 = vmatmul.mubr.msk.f32.vlgmr.msra.gmra.mrb[8].mxu0 %vm311_vm0, %v790_v12 }
  0x95   : > { %1964 = vmatpush3.bf16.msra.mxu0 %v1931_v3  ;;  %1866 = vmatprep.mubr.msk.f32.mxu0 %vm311_vm0, %v791_v13 }
  0x96   : > { %1972 = vmatprep.subr.bf16.mxu0 %v1931_v3 }
  0x98   : > { %1867 = vmatmul.mubr.msk.f32.gmra.mrb[10].mxu0 %vm311_vm0, %v792_v14 }
  0x99   : > { %1887 = vmatprep.mubr.msk.f32.mxu0 %vm311_vm0, %v1030_v15 }
  0x9c   : > { %1888 = vmatmul.mubr.msk.f32.vlgmr.msra.gmra.mrb[12].mxu0 %vm311_vm0, %v1031_v16 }
  0x9d   : > { %1890 = vmatprep.mubr.msk.f32.mxu0 %vm311_vm0, %v1032_v17  ;;  %1974 = vmatpush3.bf16.msra.mxu0 %v1931_v3 }
  0xa0   : > { %1891 = vmatmul.mubr.msk.f32.gmra.mrb[14].mxu0 %vm311_vm0, %v1033_v18 }
  0xa1   : > { %1911 = vmatprep.mubr.msk.f32.mxu0 %vm311_vm0, %v1271_v19 }
  0xa4   : > { %1912 = vmatmul.mubr.msk.f32.vlgmr.msra.gmra.mrb[16].mxu0 %vm311_vm0, %v1272_v20 }
  0xa5   : > { %1914 = vmatprep.mubr.msk.f32.mxu0 %vm311_vm0, %v1273_v21 }
  0xa8   : > { %1915 = vmatmul.mubr.msk.f32.gmra.mrb[18].mxu0 %vm311_vm0, %v1274_v22 }
 0x157   : > { %v1817_v25 = vpop.f32.mrb[0].mxu0 }
 0x158   : > { %v390_v26 = vpop.f32.mrb[1].mxu0 }
 0x159   : > { %v1936_v27 = vpack.c.bf16 %v1817_v25, %v390_v26 }
 0x15b   : > { %v1820_v28 = vpop.f32.mrb[2].mxu0  ;;  %1937 = vmatpush3.bf16.msra.mxu1 %v1936_v27 }
 0x15c   : > { %v400_v30 = vpop.f32.mrb[3].mxu0  ;;  %1938 = vmatprep.subr.bf16.mxu1 %v2221_v23 }
 0x15d   : > { %v1939_v31 = vpack.c.bf16 %v1820_v28, %v400_v30 }
 0x15e   : > { %1826 = vmatmul.mubr.msk.f32.vlgmr.msra.gmra.mrb[0].mxu1 %vm311_vm0, %v2476_v29 }
 0x15f   : > { %1940 = vmatpush3.bf16.msra.mxu1 %v1939_v31  ;;  %v1841_v32 = vpop.f32.mrb[4].mxu0  ;;  %1832 = vmatprep.mubr.msk.f32.mxu1 %vm2222_vm1, %v2223_v24 }
 0x160   : > { %v630_v33 = vpop.f32.mrb[5].mxu0  ;;  %1945 = vmatprep.subr.bf16.mxu1 %v2221_v23 }
 0x161   : > { %v1946_v34 = vpack.c.bf16 %v1841_v32, %v630_v33 }
 0x162   : > { %1833 = vmatmul.mubr.msk.f32.vlgmr.msra.gmra.mrb[2].mxu1 %vm311_vm0, %v2476_v29 }
 0x163   : > { %v1844_v35 = vpop.f32.mrb[6].mxu0  ;;  %1947 = vmatpush3.bf16.msra.mxu1 %v1946_v34  ;;  %1849 = vmatprep.mubr.msk.f32.mxu1 %vm2222_vm1, %v2223_v24 }
 0x164   : > { %v640_v36 = vpop.f32.mrb[7].mxu0  ;;  %1948 = vmatprep.subr.bf16.mxu1 %v2221_v23 }
 0x165   : > { %v1949_v37 = vpack.c.bf16 %v1844_v35, %v640_v36 }
 0x166   : > { %1850 = vmatmul.mubr.msk.f32.vlgmr.msra.gmra.mrb[4].mxu1 %vm311_vm0, %v2476_v29 }
 0x167   : > { %1950 = vmatpush3.bf16.msra.mxu1 %v1949_v37  ;;  %v1865_v38 = vpop.f32.mrb[8].mxu0  ;;  %1856 = vmatprep.mubr.msk.f32.mxu1 %vm2222_vm1, %v2223_v24 }
 0x168   : > { %v871_v39 = vpop.f32.mrb[9].mxu0  ;;  %1955 = vmatprep.subr.bf16.mxu1 %v2221_v23 }
 0x169   : > { %v1956_v40 = vpack.c.bf16 %v1865_v38, %v871_v39 }
 0x16a   : > { %1857 = vmatmul.mubr.msk.f32.vlgmr.msra.gmra.mrb[6].mxu1 %vm311_vm0, %v2476_v29 }
 0x16b   : > { %v1868_v41 = vpop.f32.mrb[10].mxu0  ;;  %1957 = vmatpush3.bf16.msra.mxu1 %v1956_v40  ;;  %1873 = vmatprep.mubr.msk.f32.mxu1 %vm2222_vm1, %v2223_v24 }
 0x16c   : > { %v881_v42 = vpop.f32.mrb[11].mxu0  ;;  %1958 = vmatprep.subr.bf16.mxu1 %v2221_v23 }
 0x16d   : > { %v1959_v43 = vpack.c.bf16 %v1868_v41, %v881_v42 }
 0x16e   : > { %1874 = vmatmul.mubr.msk.f32.vlgmr.msra.gmra.mrb[8].mxu1 %vm311_vm0, %v2476_v29 }
 0x16f   : > { %1960 = vmatpush3.bf16.msra.mxu1 %v1959_v43  ;;  %v1889_v44 = vpop.f32.mrb[12].mxu0  ;;  %1880 = vmatprep.mubr.msk.f32.mxu1 %vm2222_vm1, %v2223_v24 }
 0x170   : > { %v1112_v45 = vpop.f32.mrb[13].mxu0  ;;  %1965 = vmatprep.subr.bf16.mxu1 %v2221_v23 }
 0x171   : > { %v1966_v46 = vpack.c.bf16 %v1889_v44, %v1112_v45 }
 0x172   : > { %1881 = vmatmul.mubr.msk.f32.vlgmr.msra.gmra.mrb[10].mxu1 %vm311_vm0, %v2476_v29 }
 0x173   : > { %v1892_v47 = vpop.f32.mrb[14].mxu0  ;;  %1967 = vmatpush3.bf16.msra.mxu1 %v1966_v46  ;;  %1897 = vmatprep.mubr.msk.f32.mxu1 %vm2222_vm1, %v2223_v24 }
 0x174   : > { %v1122_v48 = vpop.f32.mrb[15].mxu0  ;;  %1968 = vmatprep.subr.bf16.mxu1 %v2221_v23 }
 0x175   : > { %v1969_v49 = vpack.c.bf16 %v1892_v47, %v1122_v48 }
 0x176   : > { %1898 = vmatmul.mubr.msk.f32.vlgmr.msra.gmra.mrb[12].mxu1 %vm311_vm0, %v2476_v29 }
 0x177   : > { %1970 = vmatpush3.bf16.msra.mxu1 %v1969_v49  ;;  %v1913_v50 = vpop.f32.mrb[16].mxu0  ;;  %1904 = vmatprep.mubr.msk.f32.mxu1 %vm2222_vm1, %v2223_v24 }
 0x178   : > { %v1353_v51 = vpop.f32.mrb[17].mxu0  ;;  %1975 = vmatprep.subr.bf16.mxu1 %v2221_v23 }
 0x179   : > { %v1976_v52 = vpack.c.bf16 %v1913_v50, %v1353_v51  ;;  %v1563_v51 = vlaneseq }
 0x17a   : > { %1905 = vmatmul.mubr.msk.f32.vlgmr.msra.gmra.mrb[14].mxu1 %vm311_vm0, %v2476_v29 }
 0x17b   : > { %v1916_v53 = vpop.f32.mrb[18].mxu0  ;;  %1977 = vmatpush3.bf16.msra.mxu1 %v1976_v52  ;;  %1921 = vmatprep.mubr.msk.f32.mxu1 %vm2222_vm1, %v2223_v24 }
 0x17c   : > { %v1363_v54 = vpop.f32.mrb[19].mxu0  ;;  %1978 = vmatprep.subr.bf16.mxu1 %v2221_v23 }
 0x17d   : > { %v1979_v55 = vpack.c.bf16 %v1916_v53, %v1363_v54 }
 0x17e   : > { %1922 = vmatmul.mubr.msk.f32.vlgmr.msra.gmra.mrb[16].mxu1 %vm311_vm0, %v2476_v29 }
 0x17f   : > { %1980 = vmatpush3.bf16.msra.mxu1 %v1979_v55  ;;  %1928 = vmatprep.mubr.msk.f32.mxu1 %vm2222_vm1, %v2223_v24 }
 0x182   : > { %1929 = vmatmul.mubr.msk.f32.vlgmr.msra.gmra.mrb[18].mxu1 %vm311_vm0, %v2476_v29 }
 0x231   : > { %v478_v56 = vpop.f32.mrb[0].mxu1 }
 0x232   : > { %v1827_v57 = vpop.f32.mrb[1].mxu1  ;;  %v1512_v61 = vmul.f32 %v478_v56, %v478_v56 }
 0x233   : > { %v1564_v57 = vshrl.u32 %v1563_v51, 7 }
 0x235   : > { %v548_v58 = vpop.f32.mrb[2].mxu1 }
 0x236   : > { %v1834_v59 = vpop.f32.mrb[3].mxu1  ;;  %v1513_v3 = vmul.f32 %v548_v58, %v548_v58 }
 0x239   : > { %v715_v60 = vpop.f32.mrb[4].mxu1 }
 0x23a   : > { %v1514_v62 = vmul.f32 %v715_v60, %v715_v60  ;;  %v1516_v63 = vmul.f32 %v715_v60, %v478_v56  ;;  %v1851_v0 = vpop.f32.mrb[5].mxu1 }
 0x23c   : > { %v1534_v1 = vadd.f32 %v1514_v62, %v1512_v61  ;;  %v1524_v25 = vmul.f32 2.0, %v1516_v63 }
 0x23d   : > { %v785_v2 = vpop.f32.mrb[6].mxu1 }
 0x23e   : > { %v1515_v4 = vmul.f32 %v785_v2, %v785_v2  ;;  %v1517_v5 = vmul.f32 %v785_v2, %v548_v58  ;;  %v1858_v6 = vpop.f32.mrb[7].mxu1  ;;  %v1536_v19 = vadd.f32 0.0001, %v1534_v1  ;;  %v1526_v33 = vadd.f32 0.0001, %v1524_v25 }
 0x23f   : > { %v1566_v58 = vstv %s1743_s8 }
 0x240   : > { %v1535_v7 = vadd.f32 %v1515_v4, %v1513_v3  ;;  %v1525_v35 = vmul.f32 2.0, %v1517_v5 }
 0x241   : > { %v956_v8 = vpop.f32.mrb[8].mxu1 }
 0x242   : > { %v1518_v9 = vsub.f32 %v956_v8, %v1512_v61  ;;  %v1875_v10 = vpop.f32.mrb[9].mxu1  ;;  %v1537_v27 = vadd.f32 0.0001, %v1535_v7  ;;  %v1527_v41 = vadd.f32 0.0001, %v1525_v35 }
 0x243   : > { %v1583_v10 = vld [vmem:[%s2581_s4] sm:$0x1] }
 0x245   : > { %v1026_v11 = vpop.f32.mrb[10].mxu1 }
 0x246   : > { %v1519_v12 = vsub.f32 %v1026_v11, %v1513_v3  ;;  %v1882_v13 = vpop.f32.mrb[11].mxu1 }
 0x249   : > { %v1197_v14 = vpop.f32.mrb[12].mxu1 }
 0x24a   : > { %v1520_v15 = vsub.f32 %v1197_v14, %v1514_v62  ;;  %v1899_v16 = vpop.f32.mrb[13].mxu1  ;;  %v1567_v62 = vadd.s32 %v1566_v58, %v1564_v57 }
 0x24c   : > { %v1538_v17 = vadd.f32 %v1520_v15, %v1518_v9  ;;  %vm1568_vm4 = vcmp.lt.s32.totalorder %v1567_v62, 8 }
 0x24d   : > { %v1267_v18 = vpop.f32.mrb[14].mxu1 }
 0x24e   : > { %v1540_v20 = vadd.f32 0.0009, %v1538_v17  ;;  %v1521_v21 = vsub.f32 %v1267_v18, %v1515_v4  ;;  %v1906_v22 = vpop.f32.mrb[15].mxu1 }
 0x250   : > { %v1542_v23 = vmul.f32 %v1540_v20, %v1536_v19  ;;  %v1539_v24 = vadd.f32 %v1521_v21, %v1519_v12 }
 0x251   : > { %v1438_v26 = vpop.f32.mrb[16].mxu1 }
 0x252   : > { %2048 = vrcp.f32 %v1542_v23  ;;  %v1541_v28 = vadd.f32 0.0009, %v1539_v24  ;;  %v1522_v29 = vsub.f32 %v1438_v26, %v1516_v63  ;;  %v1923_v30 = vpop.f32.mrb[17].mxu1 }
 0x254   : > { %v1543_v31 = vmul.f32 %v1541_v28, %v1537_v27  ;;  %v1528_v32 = vmul.f32 2.0, %v1522_v29 }
 0x255   : > { %v1508_v34 = vpop.f32.mrb[18].mxu1 }
 0x256   : > { %2050 = vrcp.f32 %v1543_v31  ;;  %v1530_v36 = vadd.f32 0.0009, %v1528_v32  ;;  %v1523_v37 = vsub.f32 %v1508_v34, %v1517_v5  ;;  %v1930_v38 = vpop.f32.mrb[19].mxu1 }
 0x258   : > { %v1532_v39 = vmul.f32 %v1530_v36, %v1526_v33  ;;  %v1529_v40 = vmul.f32 2.0, %v1523_v37 }
 0x25a   : > { %v1531_v42 = vadd.f32 0.0009, %v1529_v40 }
 0x25c   : > { %v2049_v43 = vpop.eup %2048  ;;  %v1533_v44 = vmul.f32 %v1531_v42, %v1527_v41 }
 0x25d   : > { %v1546_v45 = vmul.f32 %v2049_v43, %v1532_v39 }
 0x25f   : > { %v1549_v46 = vsel %vm1548_vm2, %v1546_v45, 0.0 }
 0x260   : > { %v2051_v47 = vpop.eup %2050  ;;  %v1550_v48 = vrot.slane %v1549_v46, 4 }
 0x261   : > { %v1547_v49 = vmul.f32 %v2051_v47, %v1533_v44 }
 0x262   : > { %v1551_v50 = vadd.f32 %v1550_v48, %v1549_v46 }
 0x263   : > { %v1556_v52 = vsel %vm1548_vm2, %v1547_v49, 0.0 }
 0x264   : > { %v1552_v53 = vrot.slane %v1551_v50, 2  ;;  %v1557_v54 = vrot.slane %v1556_v52, 4 }
 0x266   : > { %v1553_v55 = vadd.f32 %v1552_v53, %v1551_v50  ;;  %v1558_v56 = vadd.f32 %v1557_v54, %v1556_v52 }
 0x268   : > { %v1559_v59 = vrot.slane %v1558_v56, 2  ;;  %v1554_v60 = vrot.slane %v1553_v55, 1 }
 0x26a   : > { %v1560_v61 = vadd.f32 %v1559_v59, %v1558_v56  ;;  %v1555_v0 = vadd.f32 %v1554_v60, %v1553_v55 }
 0x26c   : > { %v1561_v63 = vrot.slane %v1560_v61, 1 }
 0x26e   : > { %v1562_v1 = vadd.f32 %v1561_v63, %v1560_v61 }
 0x270   : > { %v1572_v2 = vsel %vm1571_vm3, %v1562_v1, %v1555_v0 }
 0x271   : > { %v1574_v3 = vsel %vm1568_vm4, %v1572_v2, 0.0 }
 0x272   : > { %v1576_v4 = vsel %vm1575_vm5, %v1574_v3, 0.0 }
 0x273   : > { %v1577_v5 = vrot.slane %v1576_v4, 4 }
 0x275   : > { %v1578_v6 = vadd.f32 %v1577_v5, %v1576_v4 }
 0x277   : > { %v1579_v7 = vrot.slane %v1578_v6, 2 }
 0x279   : > { %v1580_v8 = vadd.f32 %v1579_v7, %v1578_v6 }
 0x27b   : > { %v1581_v9 = vrot.slane %v1580_v8, 1 }
 0x27d   : > { %v1582_v11 = vadd.f32 %v1581_v9, %v1580_v8 }
 0x27f   : > { %v1584_v12 = vmul.f32 %v1583_v10, %v1582_v11 }
 0x281   : > { %1585 = vst [vmem:[%s297_s16] sm:$0x1] %v1584_v12 }
 0x282   : > { %2153 = shalt.err (!%p2150_p6)
}
 0x283   : > { %s2154_s20 = scalar_lea.hbm %s2534_s28, 16  ;;  %s2158_s27 = scalar_lea.hbm %s2582_s5, 64 }
 0x284   : > { %p2155_p8 = scmp.ne.s32.totalorder %s2534_s28, %s2154_s20  ;;  %p2159_p4 = scmp.lt.u32.totalorder %s2534_s28, %s2582_s5 }
 0x285   : > { %p2160_p10 = scmp.lt.u32.totalorder %s2158_s27, %s2154_s20  ;;  %p2162_p3 = scmp.lt.u32.totalorder %s2154_s20, %s2534_s28 }
 0x286   : > { %p2156_p11 = pnand %p2155_p8, %p2341_p12 }
 0x287   : > { %p2161_p13 = por %p2160_p10, %p2159_p4 }
 0x288   : > { %p2157_p0 = pneg %p2156_p11 }
 0x289   : > { %p2163_p7 = por %p2162_p3, %p2161_p13 }
 0x28b   : > { %p2164_p9 = pnand %p2163_p7, %p2157_p0 }
 0x28d   : > { %2167 = shalt.err (!%p2164_p9)
}
 0x28e   : > { %1989 = dma.vmem_to_hbm [thread:$0]  (%p2341_p12), %s2536_s10, 16, %s2534_s28, %s1587_s7  }
 0x28f PF: > { %p2009_p1 = scmp.ge.s32.totalorder %s2214_s21, 2  ;;  %s1611_s17 = sand.u32 1, %s2202_s18  }
 0x290   : > { %p2610_p5 = scmp.ne.s32.totalorder %s2595_s25, 0  ;;  %s1612_s8 = scalar_lea.sflag [#allocation4], %s1611_s17 }
 0x292   : > { %p2003_p2 = pnand %p2009_p1, %p2610_p5 }
 0x294   : > { %2197 = dma.done.wait (!%p2003_p2), %s1612_s8, 16  }
 0x295   : > { %2199 = vsyncadd (!%p2003_p2), %s1612_s8, 4294967280  ;;  %s2611_s23 = sld [smem:[#allocation13_spill]]  ;;  %s2612_s20 = sld [smem:[#allocation14_spill]] }
 0x296   : > { %p21_p6 = scmp.ge.s32.totalorder %s2308_s30, 6   ;;  %s2613_s18 = smov %s2206_s19 }
 0x297   : > { %s2615_s21 = smov %s2308_s30 }
 0x298   :  { %23 = sbr.rel (!%p21_p6) target bundleno = 10 (0xa), region = 102 }
 0x29b   : > { %s2614_s19 = smov %s2611_s23 }
 0x29f   :  { %1616 = vsyncpa [#allocation3], 1 }
 0x2a0   :  { %1618 = vsyncpa [#allocation3 + $0x1], 1 }
 0x2a1   :  { %1619 = vsyncpa [#allocation6], 1 }
 0x2a2   :  { %1621 = vsyncpa [#allocation6 + $0x1], 1 }
 0x2a3   :  { %1622 = vsyncpa [#allocation4], 1 }
 0x2a4   :  { %1624 = vsyncpa [#allocation4 + $0x1], 1 }

</bundles_post_ra>
